<compile_context>
chip_gen: v7x
topology: tpu7x:2x2x1
jax: 0.10.0
libtpu: 0.0.40
codegen_flags: <defaults>
</compile_context>

<pallas_src>
import functools

import jax
import jax.numpy as jnp
from jax.experimental import pallas as pl
from jax.experimental.pallas import tpu as pltpu

LANE = 128


def _project3d_kernel(p_ref, pts_ref, out_ref, *, eps):
    """One (batch, N-tile) grid step.

    p_ref   : SMEM (B, 12)        -- scalar-prefetched P = (K @ T)[:3, :], row-major
    pts_ref : VMEM (1, 4, S, 128) -- homogeneous points, lane-dense
    out_ref : VMEM (1, 3, S, 128) -- [x/(z+eps), y/(z+eps), z]
    """
    b = pl.program_id(0)

    x = pts_ref[0, 0]          # (S, 128)
    y = pts_ref[0, 1]
    z = pts_ref[0, 2]
    w = pts_ref[0, 3]

    def cam_row(r):
        # P[r, :] . [x, y, z, w] as scalar-broadcast FMAs on the VPU.
        # (An M=3 / K=4 matmul would be <0.1% MXU-utilized after padding.)
        return (p_ref[b, 4 * r + 0] * x
                + p_ref[b, 4 * r + 1] * y
                + p_ref[b, 4 * r + 2] * z
                + p_ref[b, 4 * r + 3] * w)

    cam_z = cam_row(2)
    # Exact divide (eps may be 0; approx reciprocal would blow the 1e-4 tol).
    # Memory-bound kernel -> VALU/EUP have ample slack, exact divide is free.
    inv_z = 1.0 / (cam_z + eps)
    out_ref[0, 0] = cam_row(0) * inv_z
    out_ref[0, 1] = cam_row(1) * inv_z
    out_ref[0, 2] = cam_z


def _choose_sublane_tile(nb, max_s, batch):
    """Sublane tile S for the (NB, 128) point view.

    S must be a multiple of 8 or the full extent NB.  Prefer the largest tile
    (>=1024 lands in the ~85%+ HBM-roofline regime and amortizes per-step
    overhead); cap at 2048 so double-buffered in+out blocks stay ~<15 MiB.
    Keep at least 2 total grid steps so both v7x TensorCores get work.
    """
    if nb <= 8:
        return nb                               # full-extent block is always legal
    s = min(max_s, 2048, (nb // 8) * 8)
    s = max(s, 8)
    while batch * (-(-nb // s)) < 2 and s > 8:  # megacore: >= 2 parallel steps
        s = max(8, ((s // 2) // 8) * 8)
    return s


def project3d_vis(points, K, T, *, height, width, eps=0.0, tile_sublanes=1024,
                  channels_last=True):
    """points: (B, 4, H*W) f32; K, T: (B, 4, 4) f32  ->  (B, H, W, 3) f32."""
    B, four, N = points.shape
    assert four == 4 and N == height * width

    points = points.astype(jnp.float32)
    # Hoist P = (K @ T)[:, :3, :] out of the kernel: B tiny 4x4 matmuls in XLA.
    P = jnp.matmul(K.astype(jnp.float32), T.astype(jnp.float32))[:, :3, :]
    P_flat = P.reshape(B, 12)                                  # scalar-prefetched SMEM

    # Lane-dense view of the pixel axis: N -> (NB, 128).
    NB = -(-N // LANE)
    N_pad = NB * LANE
    if N_pad != N:
        # Rare ragged path (N not a multiple of 128): the reshape needs padding.
        # Padded lanes produce garbage (possibly nan when eps == 0) and are
        # sliced away below.
        # TODO(synk): handle the N % 128 tail without a full-array pad.
        points = jnp.pad(points, ((0, 0), (0, 0), (0, N_pad - N)))
    pts4 = points.reshape(B, 4, NB, LANE)       # free bitcast when N % 128 == 0

    S = _choose_sublane_tile(NB, tile_sublanes, B)
    grid_n = pl.cdiv(NB, S)                     # partial boundary blocks: no NB padding

    # Size scoped VMEM from the tile (double-buffered in+out) so v5e's 16 MiB
    # default never constrains S >= 1024; stay within v7x's 32 MiB scoped default.
    block_bytes = (4 + 3) * S * LANE * 4
    vmem_limit = int(min(max(4 * block_bytes, 16 << 20), 32 << 20))

    out4 = pl.pallas_call(
        functools.partial(_project3d_kernel, eps=float(eps)),
        out_shape=jax.ShapeDtypeStruct((B, 3, NB, LANE), jnp.float32),
        grid_spec=pltpu.PrefetchScalarGridSpec(
            num_scalar_prefetch=1,              # P_flat -> SMEM, read with program_id(0)
            grid=(B, grid_n),
            in_specs=[
                # Homogeneous points, (S, 128)-shaped lane-dense blocks.
                pl.BlockSpec((1, 4, S, LANE), lambda b, n, p: (b, 0, n, 0)),
            ],
            out_specs=pl.BlockSpec((1, 3, S, LANE), lambda b, n, p: (b, 0, n, 0)),
        ),
        compiler_params=pltpu.CompilerParams(
            dimension_semantics=("parallel", "parallel"),
            vmem_limit_bytes=vmem_limit),
        cost_estimate=pl.CostEstimate(
            flops=25 * B * N,                   # 12 mul + 9 add + eps-add + 2 mul + div
            transcendentals=0,
            bytes_accessed=28 * B * N),         # 16 B/pt in + 12 B/pt out
    )(P_flat, pts4)

    out_bcn = out4.reshape(B, 3, N_pad)
    if N_pad != N:
        out_bcn = out_bcn[:, :, :N]
    out_nchw = out_bcn.reshape(B, 3, height, width)
    if not channels_last:
        return out_nchw                         # consumer accepts NCHW: no transpose
    # Glue: view(B, 3, H, W).permute(0, 2, 3, 1), matching the PyTorch module.
    # Kept in the wrapper: a kernel writing (B, H, W, 3) directly would need
    # lane-interleaved 3-wide stores (see TODO at top of file).
    return out_nchw.transpose(0, 2, 3, 1)


def project3d_vis_ref(points, K, T, *, height, width, eps=0.0):
    """Pure-JAX reference mirroring the PyTorch module."""
    B = points.shape[0]
    P = jnp.matmul(K, T)[:, :3, :]
    cam = jnp.matmul(P, points)
    pix = cam[:, :2, :] / (cam[:, 2:3, :] + eps)
    pix = jnp.concatenate([pix, cam[:, 2:3, :]], axis=1)
    return pix.reshape(B, 3, height, width).transpose(0, 2, 3, 1)


if __name__ == "__main__":
    B, H, W = 2, 16, 16
    N = H * W
    eps = 0.0

    key = jax.random.PRNGKey(0)
    k_pts, k_K, k_T = jax.random.split(key, 3)

    # Homogeneous 3D points with positive depth (so the perspective divide is
    # well conditioned with eps=0).
    xyz = jax.random.uniform(k_pts, (B, 3, N), jnp.float32, minval=-2.0, maxval=2.0)
    xyz = xyz.at[:, 2, :].set(jnp.abs(xyz[:, 2, :]) + 1.0)
    ones = jnp.ones((B, 1, N), jnp.float32)
    points = jnp.concatenate([xyz, ones], axis=1)                    # (B, 4, N)

    # Camera intrinsics K (4x4) and pose T (4x4), deterministic.
    K_base = jnp.array([[float(W), 0.0, W / 2.0, 0.0],
                        [0.0, float(H), H / 2.0, 0.0],
                        [0.0, 0.0, 1.0, 0.0],
                        [0.0, 0.0, 0.0, 1.0]], jnp.float32)
    K = jnp.broadcast_to(K_base, (B, 4, 4))
    K = K + 0.01 * jax.random.normal(k_K, (B, 4, 4), jnp.float32)

    T = jnp.broadcast_to(jnp.eye(4, dtype=jnp.float32), (B, 4, 4))
    T = T + 0.01 * jax.random.normal(k_T, (B, 4, 4), jnp.float32)

    out = project3d_vis(points, K, T, height=H, width=W, eps=eps)
    out = jax.block_until_ready(out)

    ref = project3d_vis_ref(points, K, T, height=H, width=W, eps=eps)
    assert out.shape == (B, H, W, 3), out.shape
    assert jnp.allclose(out, ref, atol=1e-4, rtol=1e-4), "mismatch vs reference"

    print("KERNEL_OK")
</pallas_src>

<mosaic_0001>
module attributes {stable_mosaic.version = 11 : i64} {
  func.func @_project3d_kernel(%arg0: i32, %arg1: i32, %arg2: memref<2x12xf32, #tpu.memory_space<smem>>, %arg3: memref<1x4x2x128xf32, #tpu.memory_space<vmem>>, %arg4: memref<1x3x2x128xf32, #tpu.memory_space<vmem>>) attributes {dimension_semantics = [#tpu.dimension_semantics<parallel>, #tpu.dimension_semantics<parallel>], iteration_bounds = array<i64: 2, 1>, scalar_prefetch = 1 : i64, scratch_operands = 0 : i64, tpu.core_type = #tpu.core_type<tc>, window_params = [{transform_indices = @transform_0, window_bounds = array<i64: 1, 4, 2, 128>}, {transform_indices = @transform_1, window_bounds = array<i64: 1, 3, 2, 128>}]} {
    %c0 = arith.constant 0 : index
    %c0_0 = arith.constant 0 : index
    %c0_1 = arith.constant 0 : index
    %c0_2 = arith.constant 0 : index
    %0 = vector.load %arg3[%c0, %c0_0, %c0_1, %c0_2] : memref<1x4x2x128xf32, #tpu.memory_space<vmem>>, vector<1x1x2x128xf32>
    %1 = vector.shape_cast %0 : vector<1x1x2x128xf32> to vector<2x128xf32>
    %c0_3 = arith.constant 0 : index
    %c1 = arith.constant 1 : index
    %c0_4 = arith.constant 0 : index
    %c0_5 = arith.constant 0 : index
    %2 = vector.load %arg3[%c0_3, %c1, %c0_4, %c0_5] : memref<1x4x2x128xf32, #tpu.memory_space<vmem>>, vector<1x1x2x128xf32>
    %3 = vector.shape_cast %2 : vector<1x1x2x128xf32> to vector<2x128xf32>
    %c0_6 = arith.constant 0 : index
    %c2 = arith.constant 2 : index
    %c0_7 = arith.constant 0 : index
    %c0_8 = arith.constant 0 : index
    %4 = vector.load %arg3[%c0_6, %c2, %c0_7, %c0_8] : memref<1x4x2x128xf32, #tpu.memory_space<vmem>>, vector<1x1x2x128xf32>
    %5 = vector.shape_cast %4 : vector<1x1x2x128xf32> to vector<2x128xf32>
    %c0_9 = arith.constant 0 : index
    %c3 = arith.constant 3 : index
    %c0_10 = arith.constant 0 : index
    %c0_11 = arith.constant 0 : index
    %6 = vector.load %arg3[%c0_9, %c3, %c0_10, %c0_11] : memref<1x4x2x128xf32, #tpu.memory_space<vmem>>, vector<1x1x2x128xf32>
    %7 = vector.shape_cast %6 : vector<1x1x2x128xf32> to vector<2x128xf32>
    %8 = arith.index_cast %arg0 : i32 to index
    %c8 = arith.constant 8 : index
    %9 = memref.load %arg2[%8, %c8] : memref<2x12xf32, #tpu.memory_space<smem>>
    %10 = vector.broadcast %9 : f32 to vector<2x128xf32>
    %11 = arith.mulf %10, %1 : vector<2x128xf32>
    %12 = arith.index_cast %arg0 : i32 to index
    %c9 = arith.constant 9 : index
    %13 = memref.load %arg2[%12, %c9] : memref<2x12xf32, #tpu.memory_space<smem>>
    %14 = vector.broadcast %13 : f32 to vector<2x128xf32>
    %15 = arith.mulf %14, %3 : vector<2x128xf32>
    %16 = arith.addf %11, %15 : vector<2x128xf32>
    %17 = arith.index_cast %arg0 : i32 to index
    %c10 = arith.constant 10 : index
    %18 = memref.load %arg2[%17, %c10] : memref<2x12xf32, #tpu.memory_space<smem>>
    %19 = vector.broadcast %18 : f32 to vector<2x128xf32>
    %20 = arith.mulf %19, %5 : vector<2x128xf32>
    %21 = arith.addf %16, %20 : vector<2x128xf32>
    %22 = arith.index_cast %arg0 : i32 to index
    %c11 = arith.constant 11 : index
    %23 = memref.load %arg2[%22, %c11] : memref<2x12xf32, #tpu.memory_space<smem>>
    %24 = vector.broadcast %23 : f32 to vector<2x128xf32>
    %25 = arith.mulf %24, %7 : vector<2x128xf32>
    %26 = arith.addf %21, %25 : vector<2x128xf32>
    %cst = arith.constant 0.000000e+00 : f32
    %27 = vector.broadcast %cst : f32 to vector<2x128xf32>
    %28 = arith.addf %26, %27 : vector<2x128xf32>
    %cst_12 = arith.constant 1.000000e+00 : f32
    %29 = vector.broadcast %cst_12 : f32 to vector<2x128xf32>
    %30 = arith.divf %29, %28 : vector<2x128xf32>
    %31 = arith.index_cast %arg0 : i32 to index
    %c0_13 = arith.constant 0 : index
    %32 = memref.load %arg2[%31, %c0_13] : memref<2x12xf32, #tpu.memory_space<smem>>
    %33 = vector.broadcast %32 : f32 to vector<2x128xf32>
    %34 = arith.mulf %33, %1 : vector<2x128xf32>
    %35 = arith.index_cast %arg0 : i32 to index
    %c1_14 = arith.constant 1 : index
    %36 = memref.load %arg2[%35, %c1_14] : memref<2x12xf32, #tpu.memory_space<smem>>
    %37 = vector.broadcast %36 : f32 to vector<2x128xf32>
    %38 = arith.mulf %37, %3 : vector<2x128xf32>
    %39 = arith.addf %34, %38 : vector<2x128xf32>
    %40 = arith.index_cast %arg0 : i32 to index
    %c2_15 = arith.constant 2 : index
    %41 = memref.load %arg2[%40, %c2_15] : memref<2x12xf32, #tpu.memory_space<smem>>
    %42 = vector.broadcast %41 : f32 to vector<2x128xf32>
    %43 = arith.mulf %42, %5 : vector<2x128xf32>
    %44 = arith.addf %39, %43 : vector<2x128xf32>
    %45 = arith.index_cast %arg0 : i32 to index
    %c3_16 = arith.constant 3 : index
    %46 = memref.load %arg2[%45, %c3_16] : memref<2x12xf32, #tpu.memory_space<smem>>
    %47 = vector.broadcast %46 : f32 to vector<2x128xf32>
    %48 = arith.mulf %47, %7 : vector<2x128xf32>
    %49 = arith.addf %44, %48 : vector<2x128xf32>
    %50 = arith.mulf %49, %30 : vector<2x128xf32>
    %c0_17 = arith.constant 0 : index
    %c0_18 = arith.constant 0 : index
    %c0_19 = arith.constant 0 : index
    %c0_20 = arith.constant 0 : index
    %51 = vector.load %arg4[%c0_17, %c0_18, %c0_19, %c0_20] : memref<1x3x2x128xf32, #tpu.memory_space<vmem>>, vector<1x1x2x128xf32>
    %52 = vector.shape_cast %51 : vector<1x1x2x128xf32> to vector<2x128xf32>
    %53 = vector.shape_cast %50 : vector<2x128xf32> to vector<1x1x2x128xf32>
    tpu.vector_store %arg4[%c0_17, %c0_18, %c0_19, %c0_20], %53 {strides = array<i32>} : memref<1x3x2x128xf32, #tpu.memory_space<vmem>>, vector<1x1x2x128xf32>,
    %54 = arith.index_cast %arg0 : i32 to index
    %c4 = arith.constant 4 : index
    %55 = memref.load %arg2[%54, %c4] : memref<2x12xf32, #tpu.memory_space<smem>>
    %56 = vector.broadcast %55 : f32 to vector<2x128xf32>
    %57 = arith.mulf %56, %1 : vector<2x128xf32>
    %58 = arith.index_cast %arg0 : i32 to index
    %c5 = arith.constant 5 : index
    %59 = memref.load %arg2[%58, %c5] : memref<2x12xf32, #tpu.memory_space<smem>>
    %60 = vector.broadcast %59 : f32 to vector<2x128xf32>
    %61 = arith.mulf %60, %3 : vector<2x128xf32>
    %62 = arith.addf %57, %61 : vector<2x128xf32>
    %63 = arith.index_cast %arg0 : i32 to index
    %c6 = arith.constant 6 : index
    %64 = memref.load %arg2[%63, %c6] : memref<2x12xf32, #tpu.memory_space<smem>>
    %65 = vector.broadcast %64 : f32 to vector<2x128xf32>
    %66 = arith.mulf %65, %5 : vector<2x128xf32>
    %67 = arith.addf %62, %66 : vector<2x128xf32>
    %68 = arith.index_cast %arg0 : i32 to index
    %c7 = arith.constant 7 : index
    %69 = memref.load %arg2[%68, %c7] : memref<2x12xf32, #tpu.memory_space<smem>>
    %70 = vector.broadcast %69 : f32 to vector<2x128xf32>
    %71 = arith.mulf %70, %7 : vector<2x128xf32>
    %72 = arith.addf %67, %71 : vector<2x128xf32>
    %73 = arith.mulf %72, %30 : vector<2x128xf32>
    %c0_21 = arith.constant 0 : index
    %c1_22 = arith.constant 1 : index
    %c0_23 = arith.constant 0 : index
    %c0_24 = arith.constant 0 : index
    %74 = vector.load %arg4[%c0_21, %c1_22, %c0_23, %c0_24] : memref<1x3x2x128xf32, #tpu.memory_space<vmem>>, vector<1x1x2x128xf32>
    %75 = vector.shape_cast %74 : vector<1x1x2x128xf32> to vector<2x128xf32>
    %76 = vector.shape_cast %73 : vector<2x128xf32> to vector<1x1x2x128xf32>
    tpu.vector_store %arg4[%c0_21, %c1_22, %c0_23, %c0_24], %76 {strides = array<i32>} : memref<1x3x2x128xf32, #tpu.memory_space<vmem>>, vector<1x1x2x128xf32>,
    %c0_25 = arith.constant 0 : index
    %c2_26 = arith.constant 2 : index
    %c0_27 = arith.constant 0 : index
    %c0_28 = arith.constant 0 : index
    %77 = vector.load %arg4[%c0_25, %c2_26, %c0_27, %c0_28] : memref<1x3x2x128xf32, #tpu.memory_space<vmem>>, vector<1x1x2x128xf32>
    %78 = vector.shape_cast %77 : vector<1x1x2x128xf32> to vector<2x128xf32>
    %79 = vector.shape_cast %26 : vector<2x128xf32> to vector<1x1x2x128xf32>
    tpu.vector_store %arg4[%c0_25, %c2_26, %c0_27, %c0_28], %79 {strides = array<i32>} : memref<1x3x2x128xf32, #tpu.memory_space<vmem>>, vector<1x1x2x128xf32>,
    return
  }
  func.func @transform_0(%arg0: i32, %arg1: i32, %arg2: memref<2x12xf32, #tpu.memory_space<smem>>) -> (i32, i32, i32, i32) {
    %c0_i32 = arith.constant 0 : i32
    %c0_i32_0 = arith.constant 0 : i32
    %c0_i32_1 = arith.constant 0 : i32
    return %arg0, %c0_i32, %arg1, %c0_i32_0 : i32, i32, i32, i32
  }
  func.func @transform_1(%arg0: i32, %arg1: i32, %arg2: memref<2x12xf32, #tpu.memory_space<smem>>) -> (i32, i32, i32, i32) {
    %c0_i32 = arith.constant 0 : i32
    %c0_i32_0 = arith.constant 0 : i32
    %c0_i32_1 = arith.constant 0 : i32
    return %arg0, %c0_i32, %arg1, %c0_i32_0 : i32, i32, i32, i32
  }
}

</mosaic_0001>

<bundles_post_ra>
// kernel: tpu_custom_call.1
= control target key start
LH: loop header
LB: loop body
LE: loop exit
PB: predicated region body
PF: predicated region fallthrough
CT: control target
= control target key end

     0   :  { %s772_s0 = inlined_call_operand.hbm [shape: f32[2,12], index: 0, kind: input, shape index: {}]   ;;  %s773_s1 = inlined_call_operand.hbm [shape: f32[2,4,2,128], index: 1, kind: input, shape index: {}]   ;;  %s774_s2 = inlined_call_operand.hbm [shape: f32[2,3,2,128], index: 2, kind: output, shape index: {}]  }
   0x1   :  { %s421_s11 = scalar_lea.hbm %s772_s0, 32 }
   0x2   :  { %p422_p0 = scmp.ne.s32.totalorder %s772_s0, %s421_s11  ;;  %p425_p1 = scmp.lt.u32.totalorder %s421_s11, %s772_s0 }
   0x4   :  { %p427_p2 = pnand %p425_p1, %p422_p0 }
   0x6   :  { %430 = shalt.err (!%p427_p2)  }
   0x7   :  { %s547_s16 = smov [#allocation3]  }
   0x8   :  { %8 = dma.hbm_to_smem %s772_s0, 32, %s547_s16, [#allocation2] }
   0x9   :  { %513 = dma.done.wait [#allocation2], 32 }
   0xa   :  { %514 = vsyncadd [#allocation2], 4294967264 }
   0xb   :  { %10 = sfence }
   0xc   :  { %11 = vsyncpa [#allocation5], 0 }
   0xd   :  { %13 = vsyncpa [#allocation5 + $0x1], 0 }
   0xe   :  { %14 = vsyncpa [#allocation6], 0 }
   0xf   :  { %16 = vsyncpa [#allocation6 + $0x1], 0  ;;  %s581_s19 = smov 0   ;;  %s583_s20 = smov 0  }
  0x10   :  { %s585_s21 = smov 0   ;;  %s587_s22 = smov 0  }
  0x11   :  { %s589_s23 = smov 0   ;;  %s591_s24 = smov 0  }
  0x12 LB: > { %s331_s0 = sadd.s32 4294967295, %s545_s24   ;;  %s332_s25 = sadd.s32 4294967294, %s545_s24   ;;  %s545_s24 = sphi %s591_s24, %s22_s24   ;;  %s541_s23 = sphi %s589_s23, %s789_s23   ;;  %s537_s22 = sphi %s587_s22, %s788_s22   ;;  %s533_s21 = sphi %s585_s21, %s787_s21   ;;  %s529_s20 = sphi %s583_s20, %s786_s20   ;;  %s525_s19 = sphi %s581_s19, %s785_s19  }
  0x13   : > { %s34_s26 = sadd.s32 1, %s541_s23  ;;  %s43_s27 = sadd.s32 1, %s533_s21 }
  0x14   : > { %p36_p3 = scmp.ge.s32.totalorder %s34_s26, 2  ;;  %p50_p4 = scmp.ne.s32.totalorder %s533_s21, %s529_s20 }
  0x15   : > { %p51_p5 = scmp.eq.s32.totalorder %s545_s24, 0  ;;  %p56_p6 = scmp.ne.s32.totalorder %s529_s20, %s525_s19 }
  0x16   : > { %s791_s26 = smov (%p36_p3, %s34_s26), 0  ;;  %p57_p8 = scmp.eq.s32.totalorder %s331_s0, 0 }
  0x17   : > { %p622_p7 = por %p51_p5, %p50_p4  ;;  %s38_s29 = ssub.s32 %s541_s23, %s791_s26 }
  0x18   : > { %p82_p9 = scmp.eq.s32.totalorder %s331_s0, 1  ;;  %p41_p10 = scmp.eq.s32.totalorder %s38_s29, 0 }
  0x19   : > { %p628_p11 = por %p57_p8, %p56_p6  ;;  %p88_p13 = scmp.eq.s32.totalorder %s332_s25, 1 }
  0x1a   : > { %p632_p12 = por %p82_p9, %p50_p4  ;;  %p364_p2 = scmp.lt.s32.totalorder %s545_s24, 2 }
  0x1b   : > { %s637_s4 = scalar_select %p41_p10, %s533_s21, %s43_s27  }
  0x1c   : > { %s778_s3 = scalar_select %p632_p12, 1, 0 }
  0x1d   : > { %p639_p0 = por %p88_p13, %p56_p6  ;;  %s108_s6 = sand.u32 1, %s533_s21  }
  0x1e   : > { %s335_s7 = sshll.u32 %s108_s6, 3  ;;  %s349_s8 = sshll.u32 %s541_s23, 7 }
  0x1f   : > { %s779_s5 = scalar_select %p639_p0, 1, 0 }
  0x20   : > { %s650_s11 = scalar_lea.hbm %s773_s1, %s349_s8  ;;  %s112_s12 = scalar_lea.vmem [#allocation4], %s335_s7 }
  0x21   : > { %s120_s13 = sshll.u32 %s112_s12, 4  ;;  %p656_p3 = pnand %p364_p2, %p622_p7  ;;  %s652_s13 = int_to_ptr.vmem [resolvable:$true] %s120_s13 }
  0x22   : > { %s661_s15 = scalar_lea.sflag [#allocation5], %s108_s6  ;;  %s431_s16 = scalar_lea.hbm %s650_s11, 128 }
  0x23   : > { %p432_p5 = scmp.ne.s32.totalorder %s650_s11, %s431_s16  ;;  %p433_p6 = pneg %p656_p3 }
  0x24   : > { %s436_s0 = scalar_lea.hbm %s773_s1, 256  ;;  %p437_p7 = scmp.lt.u32.totalorder %s650_s11, %s773_s1 }
  0x25   : > { %p434_p8 = pnand %p433_p6, %p432_p5  ;;  %p438_p10 = scmp.lt.u32.totalorder %s436_s0, %s431_s16 }
  0x26   : > { %p440_p2 = scmp.lt.u32.totalorder %s431_s16, %s650_s11 }
  0x27   : > { %p435_p9 = pneg %p434_p8  ;;  %p439_p13 = por %p438_p10, %p437_p7 }
  0x29   : > { %p441_p1 = por %p440_p2, %p439_p13 }
  0x2b   : > { %p442_p4 = pnand %p441_p1, %p435_p9 }
  0x2d   : > { %445 = shalt.err (!%p442_p4)
}
  0x2e   : > { %s446_s28 = scalar_lea.vmem %s652_s13, 128  ;;  %s548_s29 = smov [#allocation4]  }
  0x2f   : > { %p447_p5 = scmp.ne.s32.totalorder %s652_s13, %s446_s28  ;;  %s451_s6 = sshll.u32 %s548_s29, 4  ;;  %s452_s6 = int_to_ptr.vmem [resolvable:$false] %s451_s6 }
  0x30   : > { %s453_s7 = scalar_lea.vmem %s452_s6, 256  ;;  %p454_p12 = scmp.lt.s32.totalorder %s652_s13, %s452_s6 }
  0x31   : > { %p449_p8 = pnand %p447_p5, %p433_p6  ;;  %p455_p7 = scmp.lt.s32.totalorder %s453_s7, %s446_s28 }
  0x33   : > { %p450_p0 = pneg %p449_p8  ;;  %p456_p10 = por %p455_p7, %p454_p12 }
  0x35   : > { %p457_p13 = pnand %p456_p10, %p450_p0 }
  0x37   : > { %460 = shalt.err (!%p457_p13)
}
  0x38   : > { %s549_s8 = smov 32   ;;  %s550_s9 = smov 2  }
  0x39   : > { %359 = dma.hbm_to_vmem [thread:$0]  (!%p656_p3), %s650_s11, 128, %s652_s13, %s661_s15, %s549_s8, %s549_s8, %s550_s9  }
  0x3a   : > { %p128_p1 = scmp.lt.s32.totalorder %s545_s24, 3  ;;  %p781_p4 = scmp.ge.s32.totalorder %s545_s24, 1 }
  0x3c   : > { %p129_p6 = pnand %p781_p4, %p128_p1 }
  0x3d   : > { %s693_s10 = sand.u32 (!%p129_p6), 1, %s529_s20  }
  0x3e   : > { %132 = sbr.rel (%p129_p6) target bundleno = 116 (0x74), region = 24  ;;  %s339_s12 = sshll.u32 (!%p129_p6), %s693_s10, 3 }
  0x3f   : > { %s135_s16 = scalar_lea.sflag (!%p129_p6), [#allocation5], %s693_s10  ;;  %s138_s17 = scalar_lea.vmem (!%p129_p6), [#allocation4], %s339_s12 }
  0x45   : > { %516 = dma.done.wait (%p628_p11), %s135_s16, 128  }
  0x46   : > { %518 = vsyncadd (%p628_p11), %s135_s16, 4294967168  ;;  %s702_s11 = sshll.u32 %s537_s22, 7  ;;  %v157_v0 = vld [vmem:[%s138_s17] sm:$0x3]  ;;  %v340_v1 = vld [vmem:[%s138_s17 + $0x2] sm:$0x3] }
  0x47   : > { %s165_s13 = sadd.s32 8, %s702_s11  ;;  %s169_s14 = sadd.s32 9, %s702_s11  ;;  %v341_v2 = vld [vmem:[%s138_s17 + $0x4] sm:$0x3]  ;;  %v342_v4 = vld [vmem:[%s138_s17 + $0x6] sm:$0x3] }
  0x48   : > { %s166_s15 = sld [smem:[#allocation3 + %s165_s13]]  ;;  %s174_s0 = sadd.s32 10, %s702_s11 }
  0x49   : > { %s170_s18 = sld [smem:[#allocation3 + %s169_s14]]  ;;  %s179_s30 = sadd.s32 11, %s702_s11 }
  0x4a   : > { %s175_s25 = sld [smem:[#allocation3 + %s174_s0]]  ;;  %s190_s29 = sadd.s32 1, %s702_s11 }
  0x4b   : > { %s180_s27 = sld [smem:[#allocation3 + %s179_s30]]  ;;  %s195_s6 = sadd.s32 2, %s702_s11 }
  0x4c   : > { %s187_s28 = sld [smem:[#allocation3 + %s702_s11]]  ;;  %s200_s9 = sadd.s32 3, %s702_s11 }
  0x4d   : > { %s191_s7 = sld [smem:[#allocation3 + %s190_s29]]  ;;  %s350_s12 = smul.u32 6, %s693_s10 }
  0x4e   : > { %v167_v3 = vstv %s166_s15  ;;  %s196_s8 = sld [smem:[#allocation3 + %s195_s6]]  ;;  %s207_s13 = sadd.s32 4, %s702_s11 }
  0x4f   : > { %v168_v5 = vmul.f32 %v167_v3, %v157_v0  ;;  %v171_v6 = vstv %s170_s18  ;;  %s201_s16 = sld [smem:[#allocation3 + %s200_s9]]  ;;  %s211_s14 = sadd.s32 5, %s702_s11 }
  0x50   : > { %v172_v7 = vmul.f32 %v340_v1, %v171_v6  ;;  %v176_v8 = vstv %s175_s25  ;;  %s208_s15 = sld [smem:[#allocation3 + %s207_s13]]  ;;  %s216_s17 = sadd.s32 6, %s702_s11 }
  0x51   : > { %v177_v9 = vmul.f32 %v341_v2, %v176_v8  ;;  %v181_v10 = vstv %s180_s27  ;;  %s212_s0 = sld [smem:[#allocation3 + %s211_s14]]  ;;  %s221_s30 = sadd.s32 7, %s702_s11 }
  0x52   : > { %v188_v11 = vstv %s187_s28  ;;  %v173_v12 = vadd.f32 %v172_v7, %v168_v5  ;;  %v182_v13 = vmul.f32 %v342_v4, %v181_v10  ;;  %s217_s18 = sld [smem:[#allocation3 + %s216_s17]]  ;;  %s156_s25 = scalar_lea.vmem [#allocation7], %s350_s12 }
  0x53   : > { %v189_v14 = vmul.f32 %v188_v11, %v157_v0  ;;  %v192_v16 = vstv %s191_s7  ;;  %s222_s29 = sld [smem:[#allocation3 + %s221_s30]]  ;;  %s246_s11 = sshll.u32 %s156_s25, 4  ;;  %s718_s11 = int_to_ptr.vmem [resolvable:$true] %s246_s11 }
  0x54   : > { %v178_v15 = vadd.f32 %v177_v9, %v173_v12  ;;  %v197_v17 = vstv %s196_s8  ;;  %v193_v18 = vmul.f32 %v340_v1, %v192_v16  ;;  %s351_s27 = smul.u32 96, %s537_s22  ;;  %s232_s8 = scalar_lea.sflag [#allocation6], %s693_s10 }
  0x55   : > { %v198_v21 = vmul.f32 %v341_v2, %v197_v17  ;;  %v202_v22 = vstv %s201_s16  ;;  %s461_s9 = scalar_lea.vmem %s718_s11, 96  ;;  %p782_p12 = scmp.ne.s32.totalorder %s778_s3, 0 }
  0x56   : > { %v183_v19 = vadd.f32 %v182_v13, %v178_v15  ;;  %v194_v20 = vadd.f32 %v193_v18, %v189_v14  ;;  %v209_v23 = vstv %s208_s15  ;;  %v203_v27 = vmul.f32 %v342_v4, %v202_v22  ;;  %s723_s7 = scalar_lea.hbm %s774_s2, %s351_s27  ;;  %p462_p11 = scmp.ne.s32.totalorder %s718_s11, %s461_s9 }
  0x57   : > { %v213_v24 = vstv %s212_s0  ;;  %v210_v25 = vmul.f32 %v209_v23, %v157_v0  ;;  %s551_s22 = smov [#allocation7]  }
  0x58   : > { %419 = vrcp.f32 %v183_v19  ;;  %345 = vst [vmem:[%s156_s25 + $0x4] sm:$0x3] %v183_v19  ;;  %v214_v26 = vmul.f32 %v340_v1, %v213_v24  ;;  %v218_v28 = vstv %s217_s18  ;;  %v199_v30 = vadd.f32 %v198_v21, %v194_v20  ;;  %p463_p0 = pnand %p462_p11, %p782_p12  ;;  %s465_s12 = sshll.u32 %s551_s22, 4  ;;  %s466_s12 = int_to_ptr.vmem [resolvable:$false] %s465_s12 }
  0x59   : > { %v223_v29 = vstv %s222_s29  ;;  %v219_v32 = vmul.f32 %v341_v2, %v218_v28  ;;  %s467_s16 = scalar_lea.vmem %s466_s12, 192  ;;  %p468_p9 = scmp.lt.s32.totalorder %s718_s11, %s466_s12 }
  0x5a   : > { %v215_v31 = vadd.f32 %v214_v26, %v210_v25  ;;  %v224_v33 = vmul.f32 %v342_v4, %v223_v29  ;;  %v204_v35 = vadd.f32 %v203_v27, %v199_v30  ;;  %p464_p3 = pneg %p463_p0  ;;  %p469_p2 = scmp.lt.s32.totalorder %s467_s16, %s461_s9 }
  0x5c   : > { %v220_v34 = vadd.f32 %v219_v32, %v215_v31  ;;  %p470_p5 = por %p469_p2, %p468_p9 }
  0x5e   : > { %v225_v36 = vadd.f32 %v224_v33, %v220_v34  ;;  %p471_p8 = pnand %p470_p5, %p464_p3 }
  0x62   : > { %v420_v37 = vpop.eup %419 }
  0x63   : > { %v205_v38 = vmul.f32 %v420_v37, %v204_v35  ;;  %v226_v39 = vmul.f32 %v420_v37, %v225_v36 }
  0x65   : > { %206 = vst [vmem:[%s156_s25] sm:$0x3] %v205_v38  ;;  %344 = vst [vmem:[%s156_s25 + $0x2] sm:$0x3] %v226_v39 }
  0x66   : > { %474 = shalt.err (!%p471_p8)
}
  0x67   : > { %s475_s13 = scalar_lea.hbm %s723_s7, 96  ;;  %s479_s0 = scalar_lea.hbm %s774_s2, 192 }
  0x68   : > { %p476_p7 = scmp.ne.s32.totalorder %s723_s7, %s475_s13  ;;  %p480_p1 = scmp.lt.u32.totalorder %s723_s7, %s774_s2 }
  0x69   : > { %p481_p4 = scmp.lt.u32.totalorder %s479_s0, %s475_s13  ;;  %p483_p11 = scmp.lt.u32.totalorder %s475_s13, %s723_s7 }
  0x6a   : > { %p477_p10 = pnand %p476_p7, %p782_p12 }
  0x6b   : > { %p482_p6 = por %p481_p4, %p480_p1 }
  0x6c   : > { %p478_p13 = pneg %p477_p10 }
  0x6d   : > { %p484_p0 = por %p483_p11, %p482_p6 }
  0x6f   : > { %p485_p3 = pnand %p484_p0, %p478_p13 }
  0x71   : > { %488 = shalt.err (!%p485_p3)
}
  0x72   : > { %s552_s18 = smov 32   ;;  %s553_s29 = smov 2  }
  0x73   : > { %354 = dma.vmem_to_hbm [thread:$0]  (%p782_p12), %s718_s11, 96, %s723_s7, %s232_s8, %s552_s18, %s552_s18, %s553_s29  }
  0x74 PF: > { %s261_s25 = sand.u32 1, %s525_s19   ;;  %p783_p9 = scmp.ne.s32.totalorder %s779_s5, 0 }
  0x75   : > { %p784_p2 = scmp.ge.s32.totalorder %s545_s24, 2  ;;  %s262_s27 = scalar_lea.sflag [#allocation6], %s261_s25 }
  0x77   : > { %p361_p5 = pnand %p784_p2, %p783_p9 }
  0x79   : > { %520 = dma.done.wait (!%p361_p5), %s262_s27, 96  }
  0x7a   : > { %522 = vsyncadd (!%p361_p5), %s262_s27, 4294967200  ;;  %s22_s24 = sadd.s32 1, %s545_s24   ;;  %s785_s19 = smov %s529_s20 }
  0x7b   : > { %p19_p8 = scmp.ge.s32.totalorder %s22_s24, 4   ;;  %s786_s20 = smov %s533_s21 }
  0x7c   : > { %s787_s21 = smov %s637_s4  ;;  %s788_s22 = smov %s541_s23 }
  0x7d   : > { %s789_s23 = smov %s791_s26  ;;  %21 = sbr.rel (!%p19_p8) target bundleno = 18 (0x12), region = 74 }
  0x84   :  { %267 = vsyncpa [#allocation5], 1 }
  0x85   :  { %269 = vsyncpa [#allocation5 + $0x1], 1 }
  0x86   :  { %270 = vsyncpa [#allocation6], 1 }
  0x87   :  { %272 = vsyncpa [#allocation6 + $0x1], 1 }

</bundles_post_ra>
